<compile_context>
chip_gen: v5e
topology: v5e:2x2
jax: 0.10.0
libtpu: 0.0.40
codegen_flags: <defaults>
</compile_context>

<pallas_src>
import functools

import jax
import jax.numpy as jnp
from jax.experimental import pallas as pl
from jax.experimental.pallas import tpu as pltpu

_LANE = 128
_SUBLANE = 8


def _ce_rowloss_kernel(pred_ref, tgt_ref, out_ref, *, eps: float,
                       n_rows: int, tile_n: int):
    # pred_ref: (TILE_N, C) logits (storage dtype) in VMEM
    # tgt_ref : (TILE_N, 1) int32 class ids in VMEM
    # out_ref : (1, 8, 128) f32; per-tile partial loss sum at [0,0,0]
    x = pred_ref[...].astype(jnp.float32)                       # f32 math (v5e
    t = tgt_ref[...]                                            # has no bf16 VPU)
    tile_rows, c = x.shape

    # target gather via iota-compare select on raw x (no logp / one-hot tensor)
    col = jax.lax.broadcasted_iota(jnp.int32, x.shape, 1)       # (T, C)
    x_t = jnp.sum(jnp.where(col == t, x, 0.0), axis=-1, keepdims=True)

    # numerically stable log-sum-exp over the class axis (XLU reduce + EUP exp)
    m = jnp.max(x, axis=-1, keepdims=True)                      # (T, 1)
    lse = jnp.log(jnp.sum(jnp.exp(x - m), axis=-1, keepdims=True))
    lse_m = lse + m                                             # log sum exp(x)

    nll = lse_m - x_t                                           # -logp[target]
    if eps > 0.0:
        # mean_c(-logp) = (lse + m) - mean_c(x); shares the raw-x traversal
        smooth = lse_m - jnp.sum(x, axis=-1, keepdims=True) * (1.0 / c)
        per_sample = (1.0 - eps) * nll + eps * smooth
    else:
        per_sample = nll                                        # (T, 1)

    # mask padded tail rows (their logits/targets are garbage) and reduce to a
    # single per-tile partial sum; emit a lane-dense (1,8,128) block with the
    # sum in [0,0,0] and zeros elsewhere (unmasked vst, tiny writeback).
    row = jax.lax.broadcasted_iota(jnp.int32, (tile_rows, 1), 0)
    valid = (pl.program_id(0) * tile_n + row) < n_rows
    tile_sum = jnp.sum(jnp.where(valid, per_sample, 0.0))

    sub = jax.lax.broadcasted_iota(jnp.int32, (1, _SUBLANE, _LANE), 1)
    lane = jax.lax.broadcasted_iota(jnp.int32, (1, _SUBLANE, _LANE), 2)
    out_ref[...] = jnp.where((sub == 0) & (lane == 0), tile_sum, 0.0)


def _vmem_capacity_bytes() -> int:
    # generation-aware: 128 MiB/TC on v5e/v6e, 64 MiB/TC on v7x
    try:
        info = pltpu.get_tpu_info()
        cap = getattr(info, "vmem_capacity_bytes", None)
        if cap:
            return int(cap)
    except Exception:
        pass
    return 64 * 1024 * 1024  # conservative (v7x-sized) fallback


def _choose_tiling(n: int, c: int, itemsize: int):
    """Return (tile_n, vmem_limit_bytes), sized on the f32 working set."""
    vmem_cap = _vmem_capacity_bytes()
    vmem_limit = vmem_cap // 2              # 64 MiB scoped on v5e/v6e, 32 MiB on v7x
    usable = (vmem_limit * 3) // 4          # headroom for target/output buffers

    # per-row bytes: 2x double-buffered storage tile + ~4 f32 (T, C) temporaries
    per_row = c * (2 * itemsize + 4 * 4)
    rows = usable // max(1, per_row)
    rows = (rows // 16) * 16                # sublane-aligned for f32 and bf16

    if rows < 8:
        # TODO(synk): implement a second 'arbitrary' grid axis over C with an
        #             online-logsumexp carry for vocab-scale C.
        raise NotImplementedError(
            f"num_classes={c} too large for a single row-tile in VMEM")

    if n <= rows:
        # Whole batch fits in one tile.  Split the 'parallel' axis in two when
        # there is enough work so both v7x TensorCores are used; the extra
        # ~0.35 us grid step is negligible on single-TC chips.
        if n >= 256:
            half = -(-n // 2)
            tile = -(-half // 16) * 16      # ceil to multiple of 16
            if tile < n:
                return tile, vmem_limit
        return n, vmem_limit                # full-extent single block
    return rows, vmem_limit


@functools.lru_cache(maxsize=None)
def _make_loss_call(n: int, c: int, dtype_name: str, eps: float):
    dtype = jnp.dtype(dtype_name)
    tile_n, vmem_limit = _choose_tiling(n, c, dtype.itemsize)
    num_tiles = pl.cdiv(n, tile_n)
    kernel = functools.partial(_ce_rowloss_kernel, eps=eps, n_rows=n,
                               tile_n=tile_n)
    return pl.pallas_call(
        kernel,
        out_shape=jax.ShapeDtypeStruct((num_tiles, _SUBLANE, _LANE), jnp.float32),
        grid=(num_tiles,),
        in_specs=[
            pl.BlockSpec((tile_n, c), lambda i: (i, 0)),   # logits tile
            pl.BlockSpec((tile_n, 1), lambda i: (i, 0)),   # target ids tile
        ],
        out_specs=pl.BlockSpec((1, _SUBLANE, _LANE), lambda i: (i, 0, 0)),
        compiler_params=pltpu.CompilerParams(
            dimension_semantics=("parallel",),             # no cross-step carry
            vmem_limit_bytes=vmem_limit,
        ),
    )


def create_loss(name: str):
    """JAX/Pallas equivalent of the PyTorch create_loss factory."""
    if name == 'cross_entropy':
        eps = 0.0
    elif name == 'label_smooth':
        eps = 0.1   # timm LabelSmoothingCrossEntropy default
    else:
        raise NotImplementedError(name)

    def loss_fn(predict: jnp.ndarray, target: jnp.ndarray) -> jnp.ndarray:
        # predict: (N, C) float logits (f32 or bf16); target: (N,) class ids
        n, c = predict.shape
        tgt2d = target.astype(jnp.int32).reshape(n, 1)
        call = _make_loss_call(n, c, str(predict.dtype), float(eps))
        partial_sums = call(predict, tgt2d)   # (num_tiles, 8, 128), zeros except [:,0,0]
        return jnp.sum(partial_sums) * (1.0 / n)

    return loss_fn


def _reference_loss(predict, target, eps):
    # pure-JAX reference for a sanity check
    logp = jax.nn.log_softmax(predict.astype(jnp.float32), axis=-1)
    nll = -jnp.take_along_axis(logp, target[:, None].astype(jnp.int32), axis=-1)[:, 0]
    smooth = -jnp.mean(logp, axis=-1)
    return jnp.mean((1.0 - eps) * nll + eps * smooth)


if __name__ == "__main__":
    key = jax.random.PRNGKey(0)

    ce = create_loss('cross_entropy')
    ls = create_loss('label_smooth')

    # (name, N, C, storage dtype) — first case is the tiny single-tile path,
    # the others exercise the 2-step megacore split incl. a ragged tail and
    # bf16 storage.
    cases = [
        ("small_f32", 8, 32, jnp.float32),
        ("split_tail_f32", 600, 64, jnp.float32),
        ("split_tail_bf16", 600, 64, jnp.bfloat16),
    ]

    for cname, N, C, dt in cases:
        key, kp, kt = jax.random.split(key, 3)
        predict = jax.random.normal(kp, (N, C), dtype=jnp.float32).astype(dt)
        target = jax.random.randint(kt, (N,), 0, C, dtype=jnp.int32)

        out_ce = jax.block_until_ready(ce(predict, target))
        out_ls = jax.block_until_ready(ls(predict, target))

        pred_f32 = predict.astype(jnp.float32)
        ref_ce = _reference_loss(pred_f32, target, 0.0)
        ref_ls = _reference_loss(pred_f32, target, 0.1)

        assert jnp.allclose(out_ce, ref_ce, atol=1e-4), (cname, out_ce, ref_ce)
        assert jnp.allclose(out_ls, ref_ls, atol=1e-4), (cname, out_ls, ref_ls)

    print("KERNEL_OK")
</pallas_src>

<mosaic_0001>
module attributes {stable_mosaic.version = 11 : i64} {
  func.func @_ce_rowloss_kernel(%arg0: i32, %arg1: memref<8x32xf32, #tpu.memory_space<vmem>>, %arg2: memref<8x1xi32, #tpu.memory_space<vmem>>, %arg3: memref<1x8x128xf32, #tpu.memory_space<vmem>>) attributes {dimension_semantics = [#tpu.dimension_semantics<parallel>], iteration_bounds = array<i64: 1>, scalar_prefetch = 0 : i64, scratch_operands = 0 : i64, tpu.core_type = #tpu.core_type<tc>, window_params = [{transform_indices = @transform_0, window_bounds = array<i64: 8, 32>}, {transform_indices = @transform_1, window_bounds = array<i64: 8, 1>}, {transform_indices = @transform_2, window_bounds = array<i64: 1, 8, 128>}]} {
    %c0 = arith.constant 0 : index
    %c0_0 = arith.constant 0 : index
    %0 = vector.load %arg1[%c0, %c0_0] : memref<8x32xf32, #tpu.memory_space<vmem>>, vector<8x32xf32>
    %c0_1 = arith.constant 0 : index
    %c0_2 = arith.constant 0 : index
    %1 = vector.load %arg2[%c0_1, %c0_2] : memref<8x1xi32, #tpu.memory_space<vmem>>, vector<8x1xi32>
    %2 = tpu.iota {dimensions = array<i32: 1>} : vector<8x32xi32>
    %3 = vector.broadcast %1 : vector<8x1xi32> to vector<8x32xi32>
    %4 = arith.cmpi eq, %2, %3 : vector<8x32xi32>
    %cst = arith.constant 0.000000e+00 : f32
    %5 = vector.broadcast %cst : f32 to vector<8x32xf32>
    %6 = arith.select %4, %0, %5 : vector<8x32xi1>, vector<8x32xf32>
    %cst_3 = arith.constant dense<0.000000e+00> : vector<8xf32>
    %7 = vector.multi_reduction <add>, %6, %cst_3 [1] : vector<8x32xf32> to vector<8xf32>
    %8 = vector.shape_cast %7 : vector<8xf32> to vector<8x1xf32>
    %cst_4 = arith.constant dense<0xFF800000> : vector<8xf32>
    %9 = vector.multi_reduction <maximumf>, %0, %cst_4 [1] : vector<8x32xf32> to vector<8xf32>
    %10 = vector.shape_cast %9 : vector<8xf32> to vector<8x1xf32>
    %11 = vector.broadcast %10 : vector<8x1xf32> to vector<8x32xf32>
    %12 = arith.subf %0, %11 : vector<8x32xf32>
    %13 = math.exp %12 : vector<8x32xf32>
    %cst_5 = arith.constant dense<0.000000e+00> : vector<8xf32>
    %14 = vector.multi_reduction <add>, %13, %cst_5 [1] : vector<8x32xf32> to vector<8xf32>
    %15 = vector.shape_cast %14 : vector<8xf32> to vector<8x1xf32>
    %16 = math.log %15 : vector<8x1xf32>
    %17 = arith.addf %16, %10 : vector<8x1xf32>
    %18 = arith.subf %17, %8 : vector<8x1xf32>
    %19 = tpu.iota {dimensions = array<i32: 0>} : vector<8x1xi32>
    %c8_i32 = arith.constant 8 : i32
    %20 = arith.muli %arg0, %c8_i32 : i32
    %21 = vector.broadcast %20 : i32 to vector<8x1xi32>
    %22 = arith.addi %21, %19 : vector<8x1xi32>
    %c8_i32_6 = arith.constant 8 : i32
    %23 = vector.broadcast %c8_i32_6 : i32 to vector<8x1xi32>
    %24 = arith.cmpi slt, %22, %23 : vector<8x1xi32>
    %cst_7 = arith.constant 0.000000e+00 : f32
    %25 = vector.broadcast %cst_7 : f32 to vector<8x1xf32>
    %26 = arith.select %24, %18, %25 : vector<8x1xi1>, vector<8x1xf32>
    %27 = vector.shape_cast %26 : vector<8x1xf32> to vector<1x8x1xf32>
    %cst_8 = arith.constant dense<0.000000e+00> : vector<1xf32>
    %28 = vector.multi_reduction <add>, %27, %cst_8 [1, 2] : vector<1x8x1xf32> to vector<1xf32>
    %29 = vector.shape_cast %28 : vector<1xf32> to vector<1x1x1xf32>
    %30 = vector.extract %29[0, 0, 0] : f32 from vector<1x1x1xf32>
    %31 = tpu.iota {dimensions = array<i32: 1>} : vector<1x8x128xi32>
    %32 = tpu.iota {dimensions = array<i32: 2>} : vector<1x8x128xi32>
    %c0_i32 = arith.constant 0 : i32
    %33 = vector.broadcast %c0_i32 : i32 to vector<1x8x128xi32>
    %34 = arith.cmpi eq, %31, %33 : vector<1x8x128xi32>
    %c0_i32_9 = arith.constant 0 : i32
    %35 = vector.broadcast %c0_i32_9 : i32 to vector<1x8x128xi32>
    %36 = arith.cmpi eq, %32, %35 : vector<1x8x128xi32>
    %37 = arith.andi %34, %36 : vector<1x8x128xi1>
    %cst_10 = arith.constant 0.000000e+00 : f32
    %38 = vector.broadcast %30 : f32 to vector<1x8x128xf32>
    %39 = vector.broadcast %cst_10 : f32 to vector<1x8x128xf32>
    %40 = arith.select %37, %38, %39 : vector<1x8x128xi1>, vector<1x8x128xf32>
    %c0_11 = arith.constant 0 : index
    %c0_12 = arith.constant 0 : index
    %c0_13 = arith.constant 0 : index
    %41 = vector.load %arg3[%c0_11, %c0_12, %c0_13] : memref<1x8x128xf32, #tpu.memory_space<vmem>>, vector<1x8x128xf32>
    tpu.vector_store %arg3[%c0_11, %c0_12, %c0_13], %40 {strides = array<i32>} : memref<1x8x128xf32, #tpu.memory_space<vmem>>, vector<1x8x128xf32>,
    return
  }
  func.func @transform_0(%arg0: i32) -> (i32, i32) {
    %c0_i32 = arith.constant 0 : i32
    %c0_i32_0 = arith.constant 0 : i32
    return %arg0, %c0_i32 : i32, i32
  }
  func.func @transform_1(%arg0: i32) -> (i32, i32) {
    %c0_i32 = arith.constant 0 : i32
    %c0_i32_0 = arith.constant 0 : i32
    return %arg0, %c0_i32 : i32, i32
  }
  func.func @transform_2(%arg0: i32) -> (i32, i32, i32) {
    %c0_i32 = arith.constant 0 : i32
    %c0_i32_0 = arith.constant 0 : i32
    %c0_i32_1 = arith.constant 0 : i32
    return %arg0, %c0_i32, %c0_i32_0 : i32, i32, i32
  }
}

</mosaic_0001>

<bundles_post_ra>
// kernel: tpu_custom_call.1
= control target key start
LH: loop header
LB: loop body
LE: loop exit
PB: predicated region body
PF: predicated region fallthrough
CT: control target
= control target key end

     0   :  { %vm21_vm0 = vcmask 261120   ;;  %s142_s0 = inlined_call_operand.vmem [shape: f32[8,32], index: 0, kind: input, shape index: {}]   ;;  %s143_s1 = inlined_call_operand.vmem [shape: s32[8,1], index: 1, kind: input, shape index: {}]   ;;  %s144_s2 = inlined_call_operand.hbm [shape: f32[1,8,128], index: 2, kind: output, shape index: {}]  }
   0x1   :  { %v12_v0 = vld [vmem:[%s142_s0] sm:$0xff] }
   0x2   :  { %7 = vsyncpa [#allocation3], 0  ;;  %v25_v1 = vsel %vm21_vm0, %v12_v0, -inf  ;;  %v113_v2 = vmov 0   ;;  %v13_v3 = vld [vmem:[%s143_s1] sm:$0xff]  ;;  %v14_v9 = vlaneseq  ;;  %vm45_vm2 = vcmask 7168  }
   0x3   :  { %82 = vset.pattern.permute.xlu0 %v113_v2  ;;  %s114_s0 = smov [#allocation2]   ;;  %s69_s15 = sshll.u32 %s144_s2, 4  ;;  %s70_s15 = int_to_ptr.hbm [resolvable:$true] %s69_s15 }
   0x4   :  { %26 = vmax.xlane.f32.xlu0 %v25_v1  ;;  %v15_v10 = vand.u32 127, %v14_v9  ;;  %v39_v28 = vshrl.u32 %v14_v9, 7  ;;  %s67_s1 = sshll.u32 %s114_s0, 4  ;;  %s68_s1 = int_to_ptr.vmem [resolvable:$true] %s67_s1 }
   0x6   :  { %vm56_vm3 = vcmp.eq.s32.totalorder %v39_v28, 0  ;;  %vm57_vm4 = vcmp.eq.s32.totalorder %v15_v10, 0 }
   0x7   :  { %vm58_vm5 = vmand %vm56_vm3, %vm57_vm4 }
  0x18   :  { %17 = vperm.xlu0 %82, %v13_v3  }
  0x77   :  { %v27_v4 = vpop.xlane.xlu0 %26 }
  0x78   :  { %v28_v5 = vsub.f32 %v12_v0, %v27_v4 }
  0x7a   :  { %v29_v6 = vmul.f32 1.442695, %v28_v5 }
  0x7c   :  { %83 = vpow2.f32 %v29_v6 }
  0x82   :  { %v84_v7 = vpop.eup %83 }
  0x83   :  { %v31_v8 = vsel %vm21_vm0, %v84_v7, 0.0 }
  0x84   :  { %32 = vadd.xlane.f32.xlu1 %v31_v8 }
  0x8a   :  { %v18_v11 = vpop.permute.xlu0 %17 }
  0x8b   :  { %vm19_vm1 = vcmp.eq.s32.totalorder %v15_v10, %v18_v11 }
  0x8c   :  { %v20_v12 = vsel %vm19_vm1, %v12_v0, 0.0 }
  0x8d   :  { %v22_v13 = vsel %vm21_vm0, %v20_v12, 0.0 }
  0x8e   :  { %23 = vadd.xlane.f32.xlu1 %v22_v13 }
  0xf7   :  { %v33_v14 = vpop.xlane.xlu1 %32 }
  0xf8   :  { %85 = vlog2.f32 %v33_v14 }
  0xfe   :  { %v86_v15 = vpop.eup %85 }
  0xff   :  { %v35_v16 = vmul.f32 0.6931472, %v86_v15 }
 0x101   :  { %v36_v17 = vadd.f32 %v35_v16, %v27_v4  ;;  %v24_v18 = vpop.xlane.xlu1 %23 }
 0x103   :  { %v37_v19 = vsub.f32 %v36_v17, %v24_v18 }
 0x105   :  { %v46_v20 = vsel %vm45_vm2, %v37_v19, 0.0 }
 0x106   :  { %47 = vadd.xlane.f32.xlu2 %v46_v20 }
 0x179   :  { %v48_v21 = vpop.xlane.xlu2 %47 }
 0x17a   :  { %v49_v22 = vrot.slane %v48_v21, 4 }
 0x17c   :  { %v50_v23 = vadd.f32 %v49_v22, %v48_v21 }
 0x17e   :  { %v51_v24 = vrot.slane %v50_v23, 2 }
 0x180   :  { %v52_v25 = vadd.f32 %v51_v24, %v50_v23 }
 0x182   :  { %v53_v26 = vrot.slane %v52_v25, 1 }
 0x184   :  { %v54_v27 = vadd.f32 %v53_v26, %v52_v25 }
 0x186   :  { %78 = vpush %v54_v27 }
 0x1b7   :  { %s79_s16 = spop %78 }
 0x1b8   :  { %v59_v29 = vstv %s79_s16 }
 0x1b9   :  { %v60_v30 = vsel %vm58_vm5, %v59_v29, 0.0 }
 0x1ba   :  { %61 = vst [vmem:[#allocation2] sm:$0xff] %v60_v30 }
 0x1bb   :  { %72 = dma.vmem_to_hbm [thread:$0]  %s68_s1, 128, %s70_s15, [#allocation3]  }
 0x1bc   :  { %111 = dma.done.wait [#allocation3], 128  }
 0x1bd   :  { %112 = vsyncadd [#allocation3], 4294967168 }
 0x1be   :  { %77 = vsyncpa [#allocation3], 1 }

</bundles_post_ra>
